<compile_context>
chip_gen: v7x
topology: tpu7x:2x2x1
jax: 0.10.0
libtpu: 0.0.40
codegen_flags: <defaults>
</compile_context>

<pallas_src>
import functools
import math

import numpy as np
import jax
import jax.numpy as jnp
from jax.experimental import pallas as pl
from jax.experimental.pallas import tpu as pltpu

TAU = 2.0 * math.pi
_HALF_PI = 0.5 * math.pi
_LANES = 128
_MAX_TILE_ROWS = 8192          # sublane rows per block (multiple of 8)
_MAX_PACKED_W = 4096           # widest packed lane row we are willing to build
_SMALL_N_BYTES = 256 * 1024    # below this, plain XLA beats kernel-launch cost


def _make_freq(out_dim, min_wavelength, max_wavelength):
    # torch.logspace(log2(min), log2(max), steps=out_dim//2, base=2)
    half = out_dim // 2
    wavelengths = 2.0 ** np.linspace(
        math.log2(min_wavelength), math.log2(max_wavelength), half,
        dtype=np.float32)
    return (TAU / wavelengths).astype(np.float32)


def _pick_block_budget():
    """Generation-aware (output-block byte cap, scoped-VMEM request)."""
    try:
        vmem = int(pltpu.get_tpu_info().vmem_capacity_bytes)
    except Exception:
        vmem = 64 << 20                      # conservative (v7x-sized) default
    if vmem >= (96 << 20):                   # v5e / v6e: 128 MiB physical VMEM
        return 4 << 20, 64 << 20
    return 2 << 20, 32 << 20                 # v7x: 64 MiB physical VMEM


def _sinusoidal_kernel(t_ref, coef_ref, out_ref, *, groups):
    # t_ref:    (tile_rows, groups)  f32 timepoints (`groups` per output row)
    # coef_ref: (groups + 1, w)      f32 pinned block: rows [0:groups] are the
    #                                packed frequency matrix, row [groups] is
    #                                the phase (0 sin-half / pi/2 cos-half).
    # out_ref:  (tile_rows, w)
    t = t_ref[...]
    phase = coef_ref[groups:groups + 1, :]            # (1, w), sublane-bcast
    if groups == 1:
        # Plain outer product: VPU broadcast multiply (K==1, no MXU needed).
        theta = t * coef_ref[0:1, :] + phase
    else:
        # Timepoint expansion + freq multiply fused into one matmul on the
        # otherwise-idle MXU.  HIGHEST precision is required so the f32
        # timepoints are not truncated to bf16 on the MXU.
        theta = jnp.dot(
            t, coef_ref[0:groups, :],
            precision=jax.lax.Precision.HIGHEST,
            preferred_element_type=jnp.float32,
        ) + phase
    # Single EUP transcendental per element: cos(x) == sin(x + pi/2).
    out_ref[...] = jnp.sin(theta).astype(out_ref.dtype)


def sinusoidal_embedding(t, out_dim, *, min_wavelength=4.0,
                         max_wavelength=10000.0 / TAU,
                         out_dtype=jnp.float32,
                         small_n_threshold_bytes=_SMALL_N_BYTES):
    if out_dim % 2 != 0:
        raise ValueError(f"output dimension must be even, not {out_dim}")
    if out_dim < 2:
        raise ValueError(f"output dimension must be greater than 1, not {out_dim}")

    t = jnp.asarray(t, dtype=jnp.float32)
    lead, T = t.shape[:-1], t.shape[-1]
    n = int(np.prod(t.shape, dtype=np.int64))
    half = out_dim // 2
    freq = _make_freq(out_dim, min_wavelength, max_wavelength)        # (half,)
    out_itemsize = int(jnp.dtype(out_dtype).itemsize)

    # --- Small-N fast path -------------------------------------------------
    # Typical conditioning batches are tens of timepoints; the whole output is
    # one tile and kernel launch + pipeline prologue + pad/slice dominate.
    if n * out_dim * out_itemsize < small_n_threshold_bytes:
        theta = t[..., None] * jnp.asarray(freq)
        return jnp.concatenate(
            [jnp.sin(theta), jnp.cos(theta)], axis=-1).astype(out_dtype)

    # --- Pallas path --------------------------------------------------------
    # Lane packing: `groups` consecutive timepoints per output row so the last
    # dim is a multiple of 128 (unmasked full-width stores).  Generalized via
    # lcm (e.g. out_dim=32 -> groups=4, w=128; out_dim=96 -> groups=4, w=384).
    if out_dim % _LANES == 0:
        groups = 1
    else:
        groups = math.lcm(out_dim, _LANES) // out_dim
        if groups * out_dim > _MAX_PACKED_W:
            groups = 1            # rare awkward shapes: correct, masked stores
    w = groups * out_dim

    # Pinned coefficient block (single resident VMEM input, one prologue DMA):
    #   rows [0:groups]: Efreq, row g holds [freq, freq] in its lane slot
    #   row  [groups]  : phase  (0 for the sin half, pi/2 for the cos half)
    freq_full = np.concatenate([freq, freq])                        # (out_dim,)
    phase_full = np.concatenate([np.zeros(half, np.float32),
                                 np.full(half, _HALF_PI, np.float32)])
    coef_np = np.zeros((groups + 1, w), np.float32)
    for g in range(groups):
        coef_np[g, g * out_dim:(g + 1) * out_dim] = freq_full
    coef_np[groups, :] = np.tile(phase_full, groups)
    coef = jnp.asarray(coef_np)

    # Row tiling: generation-aware byte budget (amortizes the ~0.35 us/step
    # grid overhead without blowing v7x's smaller VMEM), and >=2 grid steps
    # whenever there is enough work so both v7x TensorCores get a share.
    block_bytes, vmem_limit = _pick_block_budget()
    rows_needed = -(-n // groups)
    rows_aligned = -(-rows_needed // 8) * 8
    rows_cap = max(8, min(_MAX_TILE_ROWS,
                          (block_bytes // (out_itemsize * w)) // 8 * 8))
    target = rows_aligned if rows_aligned < 16 else -(-rows_aligned // 2)
    tile_rows = max(8, min(rows_cap, -(-target // 8) * 8))
    n_rows = -(-rows_needed // tile_rows) * tile_rows
    n_pad = n_rows * groups

    t_flat = t.reshape(n)
    if n_pad != n:
        t_flat = jnp.pad(t_flat, (0, n_pad - n))
    t2 = t_flat.reshape(n_rows, groups)

    out = pl.pallas_call(
        functools.partial(_sinusoidal_kernel, groups=groups),
        out_shape=jax.ShapeDtypeStruct((n_rows, w), out_dtype),
        grid=(n_rows // tile_rows,),
        in_specs=[
            pl.BlockSpec((tile_rows, groups), lambda i: (i, 0)),
            pl.BlockSpec((groups + 1, w), lambda i: (0, 0)),  # resident coef
        ],
        out_specs=pl.BlockSpec((tile_rows, w), lambda i: (i, 0)),
        compiler_params=pltpu.CompilerParams(
            dimension_semantics=("parallel",),        # megacore split on v7x
            vmem_limit_bytes=vmem_limit),
        cost_estimate=pl.CostEstimate(
            flops=2 * n_rows * w * groups + n_rows * w,
            transcendentals=n_rows * w,               # one sin per element
            bytes_accessed=(4 * n_rows * groups + 4 * (groups + 1) * w
                            + out_itemsize * n_rows * w),
        ),
    )(t2, coef)

    out = out.reshape(n_pad, out_dim)
    if n_pad != n:
        out = out[:n]
    return out.reshape(*lead, T, out_dim)


def _reference(t, out_dim, min_wavelength=4.0, max_wavelength=10000.0 / TAU):
    freq = jnp.asarray(_make_freq(out_dim, min_wavelength, max_wavelength))
    theta = jnp.einsum("...t,w->...tw", jnp.asarray(t, jnp.float32), freq)
    return jnp.concatenate([jnp.sin(theta), jnp.cos(theta)], axis=-1)


if __name__ == "__main__":
    key = jax.random.PRNGKey(0)
    k1, k2, k3 = jax.random.split(key, 3)

    # Case 1: tiny conditioning batch -> small-N XLA fast path.
    t1 = jax.random.uniform(k1, (2, 8), dtype=jnp.float32) * 10.0
    e1 = jax.block_until_ready(sinusoidal_embedding(t1, 32))
    assert e1.shape == (2, 8, 32), e1.shape
    np.testing.assert_allclose(np.asarray(e1), np.asarray(_reference(t1, 32)),
                               atol=1e-4, rtol=1e-4)

    # Case 2: same input forced through the Pallas kernel -> lane-packed path
    # (out_dim=32 -> groups=4, w=128) exercising the MXU expansion.
    e2 = jax.block_until_ready(
        sinusoidal_embedding(t1, 32, small_n_threshold_bytes=0))
    assert e2.shape == (2, 8, 32), e2.shape
    np.testing.assert_allclose(np.asarray(e2), np.asarray(_reference(t1, 32)),
                               atol=1e-4, rtol=1e-4)

    # Case 3: out_dim=128 -> groups=1 (already lane-dense) path with row
    # padding and a 2-step grid.
    t2 = jax.random.uniform(k2, (3, 5), dtype=jnp.float32) * 10.0
    e3 = jax.block_until_ready(
        sinusoidal_embedding(t2, 128, small_n_threshold_bytes=0))
    assert e3.shape == (3, 5, 128), e3.shape
    np.testing.assert_allclose(np.asarray(e3), np.asarray(_reference(t2, 128)),
                               atol=1e-4, rtol=1e-4)

    # Case 4: big enough to take the Pallas path under the default threshold
    # (out_dim=64 -> groups=2, multi-step pipelined grid).
    t3 = jax.random.uniform(k3, (4, 512), dtype=jnp.float32) * 10.0
    e4 = jax.block_until_ready(sinusoidal_embedding(t3, 64))
    assert e4.shape == (4, 512, 64), e4.shape
    np.testing.assert_allclose(np.asarray(e4), np.asarray(_reference(t3, 64)),
                               atol=1e-4, rtol=1e-4)

    print("KERNEL_OK")
</pallas_src>

<mosaic_0001>
module attributes {stable_mosaic.version = 11 : i64} {
  func.func @_sinusoidal_kernel(%arg0: i32, %arg1: memref<8x4xf32, #tpu.memory_space<vmem>>, %arg2: memref<5x128xf32, #tpu.memory_space<vmem>>, %arg3: memref<8x128xf32, #tpu.memory_space<vmem>>) attributes {dimension_semantics = [#tpu.dimension_semantics<parallel>], iteration_bounds = array<i64: 1>, scalar_prefetch = 0 : i64, scratch_operands = 0 : i64, tpu.core_type = #tpu.core_type<tc>, window_params = [{transform_indices = @transform_0, window_bounds = array<i64: 8, 4>}, {pipeline_mode = #tpu.pipeline_mode<synchronous>, transform_indices = @transform_1, window_bounds = array<i64: 5, 128>}, {transform_indices = @transform_2, window_bounds = array<i64: 8, 128>}]} {
    %c0 = arith.constant 0 : index
    %c0_0 = arith.constant 0 : index
    %0 = vector.load %arg1[%c0, %c0_0] : memref<8x4xf32, #tpu.memory_space<vmem>>, vector<8x4xf32>
    %c4 = arith.constant 4 : index
    %c0_1 = arith.constant 0 : index
    %1 = vector.load %arg2[%c4, %c0_1] : memref<5x128xf32, #tpu.memory_space<vmem>>, vector<1x128xf32>
    %c0_2 = arith.constant 0 : index
    %c0_3 = arith.constant 0 : index
    %2 = vector.load %arg2[%c0_2, %c0_3] : memref<5x128xf32, #tpu.memory_space<vmem>>, vector<4x128xf32>
    %cst = arith.constant dense<0.000000e+00> : vector<8x128xf32>
    %3 = tpu.matmul %0, %2, %cst {dimension_numbers = #tpu.dot_dimension_numbers<[1], [0], [0], [1], [0, 0, 1, 1], [], []>, precision = #tpu.contract_precision<fp32>} : vector<8x4xf32>, vector<4x128xf32>, vector<8x128xf32> -> vector<8x128xf32>
    %4 = vector.broadcast %1 : vector<1x128xf32> to vector<8x128xf32>
    %5 = arith.addf %3, %4 : vector<8x128xf32>
    %6 = math.sin %5 : vector<8x128xf32>
    %c0_4 = arith.constant 0 : index
    %c0_5 = arith.constant 0 : index
    %7 = vector.load %arg3[%c0_4, %c0_5] : memref<8x128xf32, #tpu.memory_space<vmem>>, vector<8x128xf32>
    tpu.vector_store %arg3[%c0_4, %c0_5], %6 {strides = array<i32>} : memref<8x128xf32, #tpu.memory_space<vmem>>, vector<8x128xf32>,
    return
  }
  func.func @transform_0(%arg0: i32) -> (i32, i32) {
    %c0_i32 = arith.constant 0 : i32
    %c0_i32_0 = arith.constant 0 : i32
    return %arg0, %c0_i32 : i32, i32
  }
  func.func @transform_1(%arg0: i32) -> (i32, i32) {
    %c0_i32 = arith.constant 0 : i32
    %c0_i32_0 = arith.constant 0 : i32
    %c0_i32_1 = arith.constant 0 : i32
    return %c0_i32, %c0_i32_0 : i32, i32
  }
  func.func @transform_2(%arg0: i32) -> (i32, i32) {
    %c0_i32 = arith.constant 0 : i32
    %c0_i32_0 = arith.constant 0 : i32
    return %arg0, %c0_i32 : i32, i32
  }
}

</mosaic_0001>

<bundles_post_ra>
// kernel: tpu_custom_call.1
= control target key start
LH: loop header
LB: loop body
LE: loop exit
PB: predicated region body
PF: predicated region fallthrough
CT: control target
= control target key end

     0   :  { %vm23_vm0 = vcmask 1043456   ;;  %v690_v2 = vmov 0.0   ;;  %vm691_vm1 = vmmov 0   ;;  %vm19_vm2 = vcmask 31744   ;;  %s762_s0 = inlined_call_operand.vmem [shape: f32[8,4], index: 0, kind: input, shape index: {}]   ;;  %s763_s1 = inlined_call_operand.vmem [shape: f32[5,128], index: 1, kind: input, shape index: {}]   ;;  %s764_s2 = inlined_call_operand.hbm [shape: f32[8,128], index: 2, kind: output, shape index: {}]  }
   0x1   :  { %v14_v0 = vld [vmem:[%s763_s1] sm:$0xf]  ;;  %624 = vmatprep.subr.mxu0 %v690_v2  ;;  %626 = vmatprep.mubr.msk.f32.mxu0 %vm691_vm1, %v690_v2 }
   0x2   :  { %v12_v1 = vld [vmem:[%s762_s0] sm:$0xff]  ;;  %v25_v3 = vsel %vm23_vm0, %v14_v0, 0 }
   0x3   :  { %7 = vsyncpa [#allocation3], 0  ;;  %v28_v4 = vand.u32 4294901760, %v25_v3  ;;  %v21_v5 = vsel %vm19_vm2, %v12_v1, 0  ;;  %609 = vmatprep.subr.mxu1 %v690_v2  ;;  %611 = vmatprep.mubr.msk.f32.mxu1 %vm691_vm1, %v690_v2  ;;  %v592_v17 = vld [vmem:[%s763_s1 + $0x4] ss:$0 sm:$0xff] }
   0x4   :  { %v93_v6 = vand.u32 4294901760, %v21_v5  ;;  %v692_v33 = vmov 2102212464   ;;  %v693_v35 = vmov 920167782   ;;  %s698_s1 = smov [#allocation2]  }
   0x5   :  { %v105_v7 = vsub.f32 %v25_v3, %v28_v4  ;;  %625 = vmatpush3.msra.mxu0 %v28_v4  ;;  %610 = vmatpush3.msra.mxu1 %v28_v4  ;;  %v694_v39 = vmov 1326507024   ;;  %v695_v41 = vmov 683565275   ;;  %v696_v43 = vmov 2475754826  }
   0x6   :  { %v94_v8 = vsub.f32 %v21_v5, %v93_v6  ;;  %614 = vmatprep.subr.mxu1 %v690_v2  ;;  %629 = vmatprep.subr.mxu0 %v690_v2  ;;  %v697_v46 = vmov 2131351028   ;;  %s584_s14 = sshll.u32 %s698_s1, 4  ;;  %s585_s14 = int_to_ptr.vmem [resolvable:$true] %s584_s14 }
   0x7   :  { %v106_v9 = vand.u32 4294901760, %v105_v7  ;;  %s666_s15 = scalar_lea.vmem %s585_s14, 128  ;;  %p671_p1 = scmp.lt.s32.totalorder %s585_s14, %s585_s14 }
   0x8   :  { %v95_v10 = vand.u32 4294901760, %v94_v8  ;;  %p667_p0 = scmp.ne.s32.totalorder %s585_s14, %s666_s15  ;;  %p672_p2 = scmp.lt.s32.totalorder %s666_s15, %s666_s15 }
   0x9   :  { %v107_v11 = vsub.f32 %v105_v7, %v106_v9 }
   0xa   :  { %627 = vmatmul.mubr.f32.vlgmr.msra.gmra.mrb[0].mxu0 %v95_v10  ;;  %v96_v12 = vsub.f32 %v94_v8, %v95_v10  ;;  %p673_p3 = por %p672_p2, %p671_p1 }
   0xb   :  { %v108_v13 = vand.u32 4294901760, %v107_v11  ;;  %630 = vmatpush3.msra.mxu0 %v106_v9  ;;  %631 = vmatprep.mubr.msk.f32.mxu0 %vm691_vm1, %v690_v2 }
   0xc   :  { %v97_v14 = vand.u32 4294901760, %v96_v12  ;;  %634 = vmatprep.subr.mxu0 %v690_v2  ;;  %p674_p4 = pnand %p673_p3, %p667_p0 }
   0xe   :  { %612 = vmatmul.mubr.f32.vlgmr.msra.gmra.mrb[0].mxu1 %v97_v14 }
   0xf   :  { %615 = vmatpush3.msra.mxu1 %v108_v13  ;;  %616 = vmatprep.mubr.msk.f32.mxu1 %vm691_vm1, %v690_v2 }
  0x10   :  { %619 = vmatprep.subr.mxu1 %v690_v2 }
  0x12   :  { %632 = vmatmul.mubr.f32.vlgmr.msra.gmra.mrb[0].mxu0 %v93_v6 }
  0x13   :  { %635 = vmatpush3.msra.mxu0 %v28_v4  ;;  %636 = vmatprep.mubr.msk.f32.mxu0 %vm691_vm1, %v690_v2 }
  0x16   :  { %617 = vmatmul.mubr.f32.vlgmr.msra.gmra.mrb[0].mxu1 %v93_v6 }
  0x17   :  { %620 = vmatpush3.msra.mxu1 %v105_v7  ;;  %621 = vmatprep.mubr.msk.f32.mxu1 %vm691_vm1, %v690_v2 }
  0x1a   :  { %637 = vmatmul.mubr.f32.vlgmr.msra.gmra.mrb[0].mxu0 %v93_v6 }
  0x1e   :  { %622 = vmatmul.mubr.f32.vlgmr.msra.gmra.mrb[0].mxu1 %v94_v8 }
  0xed   :  { %v469_v15 = vpop.f32.mrb[0].mxu0 }
  0xee   :  { %v638_v16 = vpop.f32.mrb[1].mxu0 }
  0xf1   :  { %v249_v18 = vpop.f32.mrb[0].mxu1 }
  0xf2   :  { %v639_v19 = vadd.f32 %v592_v17, %v249_v18  ;;  %v623_v20 = vpop.f32.mrb[1].mxu1 }
  0xf4   :  { %v729_v21 = vadd.f32 %v639_v19, %v469_v15 }
  0xf6   :  { %v476_v22 = vand.u32 2139095040, %v729_v21  ;;  %v473_v23 = vand.u32 2147483647, %v729_v21  ;;  %vm475_vm10 = vcmp.lt.s32.totalorder %v729_v21, 0  ;;  %vm565_vm15 = vweird.f32 %v729_v21 }
  0xf8   :  { %v477_v24 = vshrl.u32 %v476_v22, 23  ;;  %v480_v26 = vand.u32 8388607, %v473_v23  ;;  %vm474_vm11 = vcmp.le.f32.partialorder %v473_v23, 0.7853982 }
  0xfa   :  { %v593_v25 = vadd.s32 4294967169, %v477_v24  ;;  %v481_v29 = vor.u32 8388608, %v480_v26 }
  0xfc   :  { %v483_v27 = vadd.s32 1, %v593_v25  ;;  %v521_v37 = vshll.u32 %v481_v29, 8 }
  0xfe   :  { %vm484_vm3 = vcmp.gt.s32.totalorder %v483_v27, 0 }
  0xff   :  { %v485_v28 = vsel %vm484_vm3, %v483_v27, 0 }
 0x100   :  { %v487_v30 = vand.u32 31, %v485_v28  ;;  %v486_v31 = vshrl.u32 %v485_v28, 5 }
 0x102   :  { %v488_v32 = vsub.s32 32, %v487_v30  ;;  %v499_v34 = vshll.u32 %v692_v33, %v487_v30  ;;  %v502_v36 = vshll.u32 %v693_v35, %v487_v30  ;;  %v490_v42 = vshll.u32 %v695_v41, %v487_v30 }
 0x103   :  { %v493_v45 = vshll.u32 %v696_v43, %v487_v30  ;;  %v496_v48 = vshll.u32 %v697_v46, %v487_v30  ;;  %vm508_vm4 = vcmp.lt.s32.totalorder %v486_v31, 4  ;;  %vm505_vm5 = vcmp.lt.s32.totalorder %v486_v31, 1 }
 0x104   :  { %v500_v38 = vshrl.u32 %v693_v35, %v488_v32  ;;  %v503_v40 = vshrl.u32 %v694_v39, %v488_v32  ;;  %v491_v44 = vshrl.u32 %v696_v43, %v488_v32  ;;  %v494_v47 = vshrl.u32 %v697_v46, %v488_v32 }
 0x105   :  { %v497_v49 = vshrl.u32 %v692_v33, %v488_v32  ;;  %v489_v53 = vshrl.u32 %v695_v41, %v488_v32  ;;  %vm506_vm6 = vcmp.lt.s32.totalorder %v486_v31, 2  ;;  %vm507_vm7 = vcmp.lt.s32.totalorder %v486_v31, 3 }
 0x106   :  { %v501_v50 = vor.u32 %v500_v38, %v499_v34  ;;  %v504_v51 = vor.u32 %v503_v40, %v502_v36  ;;  %v492_v52 = vor.u32 %v491_v44, %v490_v42  ;;  %v495_v54 = vor.u32 %v494_v47, %v493_v45 }
 0x107   :  { %v498_v55 = vor.u32 %v497_v49, %v496_v48 }
 0x108   :  { %v514_v56 = vsel %vm508_vm4, %v501_v50, 920167782  ;;  %v518_v57 = vsel %vm508_vm4, %v504_v51, 1326507024  ;;  %v513_v59 = vsel %vm505_vm5, %v492_v52, %v495_v54  ;;  %v509_v62 = vsel %vm505_vm5, %v489_v53, %v492_v52 }
 0x109   :  { %v510_v58 = vsel %vm508_vm4, %v498_v55, 2102212464  ;;  %v515_v60 = vsel %vm507_vm7, %v498_v55, %v514_v56  ;;  %v517_v61 = vsel %vm505_vm5, %v495_v54, %v498_v55  ;;  %v519_v1 = vsel %vm507_vm7, %v501_v50, %v518_v57 }
 0x10a   :  { %v511_v63 = vsel %vm507_vm7, %v495_v54, %v510_v58  ;;  %v516_v0 = vsel %vm506_vm6, %v513_v59, %v515_v60  ;;  %v520_v2 = vsel %vm506_vm6, %v517_v61, %v519_v1 }
 0x10b   :  { %v735_v3 = vmul.u32.u64.low %v521_v37, %v516_v0  ;;  %v736_v4 = vmul.u32.u64.high %v521_v37, %v516_v0, %v735_v3  ;;  %v738_v5 = vmul.u32.u64.low %v521_v37, %v520_v2  ;;  %v739_v6 = vmul.u32.u64.high %v521_v37, %v520_v2, %v738_v5 }
 0x10c   :  { %v512_v7 = vsel %vm506_vm6, %v509_v62, %v511_v63 }
 0x10d   :  { %v531_v8 = vadd.s32 1, %v736_v4  ;;  %v528_v9 = vmul.u32 %v521_v37, %v512_v7  ;;  %vm530_vm8 = vc.u32 %v739_v6, %v735_v3  ;;  %v529_v22 = vadd.s32 %v735_v3, %v739_v6 }
 0x10f   :  { %v532_v10 = vsel %vm530_vm8, %v531_v8, %v736_v4 }
 0x110   :  { %v533_v11 = vadd.s32 %v532_v10, %v528_v9 }
 0x112   :  { %v534_v12 = vadd.s32 536870912, %v533_v11 }
 0x114   :  { %v535_v13 = vshrl.u32 %v534_v12, 30 }
 0x116   :  { %v536_v14 = vshll.u32 %v535_v13, 30  ;;  %v559_v35 = vsub.s32 4, %v535_v13 }
 0x118   :  { %v537_v15 = vsub.s32 %v533_v11, %v536_v14  ;;  %v560_v38 = vsel %vm475_vm10, %v559_v35, %v535_v13 }
 0x119   :  { %v562_v40 = vsel %vm474_vm11, 0, %v560_v38 }
 0x11a   :  { %v539_v16 = vsub.s32 0, %v537_v15  ;;  %v566_v41 = vadd.s32 3, %v562_v40 }
 0x11c   :  { %v594_v17 = vmin.u32 %v539_v16, %v537_v15  ;;  %v567_v42 = vand.u32 3, %v566_v41 }
 0x11e   :  { %v541_v18 = vclz %v594_v17  ;;  %vm572_vm12 = vcmp.eq.s32.totalorder %v567_v42, 2  ;;  %vm569_vm13 = vcmp.eq.s32.totalorder %v567_v42, 0  ;;  %vm568_vm14 = vcmp.lt.s32.totalorder %v567_v42, 2 }
 0x120   :  { %v595_v19 = vadd.s32 4294967294, %v541_v18 }
 0x122   :  { %vm596_vm9 = vcmp.lt.s32.totalorder %v595_v19, 0 }
 0x123   :  { %v544_v20 = vsel %vm596_vm9, 0, %v595_v19 }
 0x124   :  { %v545_v24 = vsub.s32 32, %v544_v20  ;;  %v549_v25 = vsub.s32 4294967266, %v544_v20  ;;  %v546_v26 = vshll.u32 %v537_v15, %v544_v20 }
 0x126   :  { %v547_v27 = vshrl.u32 %v529_v22, %v545_v24  ;;  %v550_v28 = vadd.s32 127, %v549_v25 }
 0x128   :  { %v548_v29 = vor.u32 %v547_v27, %v546_v26  ;;  %v551_v30 = vshll.u32 %v550_v28, 23 }
 0x12a   :  { %v552_v31 = vor.u32 4788187, %v551_v30  ;;  %v555_v33 = vcvt.s32.f32 %v548_v29 }
 0x12c   :  { %v553_v32 = vand.u32 2147483647, %v552_v31 }
 0x12e   :  { %v556_v34 = vmul.f32 %v555_v33, %v553_v32 }
 0x130   :  { %v557_v36 = vxor.u32 2147483648, %v556_v34 }
 0x132   :  { %v558_v37 = vsel %vm475_vm10, %v557_v36, %v556_v34 }
 0x133   :  { %v561_v39 = vsel %vm474_vm11, %v729_v21, %v558_v37 }
 0x134   :  { %662 = vcosq.f32 %v561_v39 }
 0x135   :  { %664 = vsinq.f32 %v561_v39 }
 0x13e   :  { %v663_v43 = vpop.eup %662 }
 0x13f   :  { %v665_v44 = vpop.eup %664  ;;  %v573_v45 = vxor.u32 2147483648, %v663_v43 }
 0x140   :  { %v570_v46 = vxor.u32 2147483648, %v665_v44 }
 0x141   :  { %v574_v47 = vsel %vm572_vm12, %v573_v45, %v665_v44 }
 0x142   :  { %v571_v23 = vsel %vm569_vm13, %v663_v43, %v570_v46 }
 0x143   :  { %v575_v48 = vsel %vm568_vm14, %v571_v23, %v574_v47 }
 0x144   :  { %v576_v49 = vsel %vm565_vm15, nan, %v575_v48 }
 0x145   :  { %577 = vst [vmem:[#allocation2] sm:$0xff] %v576_v49 }
 0x146   :  { %677 = shalt.err (!%p674_p4)
}
 0x147   :  { %s678_s18 = scalar_lea.hbm %s764_s2, 128 }
 0x148   :  { %p679_p5 = scmp.ne.s32.totalorder %s764_s2, %s678_s18  ;;  %p682_p6 = scmp.lt.u32.totalorder %s678_s18, %s764_s2 }
 0x14a   :  { %p684_p7 = pnand %p682_p6, %p679_p5 }
 0x14c   :  { %687 = shalt.err (!%p684_p7)
}
 0x14d   :  { %587 = dma.vmem_to_hbm [thread:$0]  %s585_s14, 128, %s764_s2, [#allocation3]  }
 0x14e   :  { %688 = dma.done.wait [#allocation3], 128  }
 0x14f   :  { %689 = vsyncadd [#allocation3], 4294967168 }
 0x150   :  { %591 = vsyncpa [#allocation3], 1 }

</bundles_post_ra>
